<compile_context>
chip_gen: v5e
topology: v5e:2x2
jax: 0.10.0
libtpu: 0.0.40
codegen_flags: <defaults>
</compile_context>

<pallas_src>
import functools

import jax
import jax.numpy as jnp
from jax.experimental import pallas as pl
from jax.experimental.pallas import tpu as pltpu


def _cdiv(a, b):
    return -(-a // b)


def _round_up(x, m):
    return ((x + m - 1) // m) * m


def _sublane_multiple(dtype):
    itemsize = jnp.dtype(dtype).itemsize
    if itemsize >= 4:
        return 8
    if itemsize == 2:
        return 16
    return 32


def _vmem_budget_bytes():
    # Conservative per-TensorCore budget: v5e/v6e have 128 MiB physical VMEM,
    # v7x only 64 MiB.  Cap so a double-buffered pipeline never overshoots.
    try:
        cap = int(pltpu.get_tpu_info().vmem_capacity_bytes)
    except Exception:
        cap = 64 * 1024 * 1024
    return min(cap // 2, 48 * 1024 * 1024)


def _pick_divisor_tile(dim, cap):
    """Largest multiple of 128 that divides round_up(dim, 128), capped at `cap`.

    Choosing a divisor of the 128-aligned extent means padding never exceeds
    the unavoidable 128-lane alignment pad.
    """
    dim_pad = _round_up(dim, 128)
    t = min(cap, dim_pad)
    t = (t // 128) * 128
    while t > 128 and dim_pad % t != 0:
        t -= 128
    return max(t, 128)


def _tile_nk(n, k, dtype):
    if jnp.dtype(dtype).itemsize <= 2:
        tn_cap, tk_cap = 2048, 1024   # bf16 / int8: wider N tile, same bytes
    else:
        tn_cap, tk_cap = 1024, 1024   # f32
    return _pick_divisor_tile(n, tn_cap), _pick_divisor_tile(k, tk_cap)


# --------------------------------------------------------------------------
# Kernel
# --------------------------------------------------------------------------
def _linear_kernel(x_ref, w_ref, b_ref, o_ref, acc_ref):
    # x_ref: (tm, tk)   w_ref: (tk, tn)  [weight pre-transposed to (K, N)]
    # b_ref: (1, tn)    o_ref: (tm, tn)  acc_ref: (tm, tn) f32 scratch
    @pl.when(pl.program_id(2) == 0)
    def _():
        acc_ref[...] = jnp.zeros_like(acc_ref)

    # Plain (tm,tk)@(tk,tn) on the MXU: K is the weight tile's sublane axis,
    # so no per-tile transpose/relayout steals the vector-extended slot.
    acc_ref[...] += jnp.dot(x_ref[...], w_ref[...],
                            preferred_element_type=jnp.float32)

    @pl.when(pl.program_id(2) == pl.num_programs(2) - 1)
    def _():
        acc = acc_ref[...] + b_ref[...].astype(jnp.float32)  # bias exactly once
        o_ref[...] = acc.astype(o_ref.dtype)


# --------------------------------------------------------------------------
# Parameter preparation (run ONCE, outside the hot path)
# --------------------------------------------------------------------------
def prepare_linear_params(weight, bias=None):
    """Transpose the PyTorch (out_features, in_features) weight to (K, N) and
    zero-pad it to the tile grid once, so the per-call hot path only pads
    activations.  Returns (w_kn_padded, bias_row_padded, meta)."""
    weight = jnp.asarray(weight)
    n, k = weight.shape
    tn, tk = _tile_nk(n, k, weight.dtype)
    n_pad = _round_up(n, tn)
    k_pad = _round_up(k, tk)

    w_kn = weight.T                                   # (K, N)
    if (k_pad, n_pad) != (k, n):
        w_kn = jnp.pad(w_kn, ((0, k_pad - k), (0, n_pad - n)))

    if bias is None:
        b_row = jnp.zeros((1, n_pad), dtype=weight.dtype)
    else:
        b_row = jnp.asarray(bias).reshape(1, n)
        if n_pad != n:
            b_row = jnp.pad(b_row, ((0, 0), (0, n_pad - n)))

    meta = dict(in_features=k, out_features=n, tn=tn, tk=tk)
    return w_kn, b_row, meta


# --------------------------------------------------------------------------
# Forward (hot path)
# --------------------------------------------------------------------------
def _linear_apply(x, w_kn, b_row, *, in_features, out_features, tn, tk):
    dims = x.shape
    x2d = x.reshape(-1, in_features)          # mirrors the view(n, d) path
    m = x2d.shape[0]
    k_pad, n_pad = w_kn.shape

    dtype = x2d.dtype
    itemsize = jnp.dtype(dtype).itemsize
    w_itemsize = jnp.dtype(w_kn.dtype).itemsize
    sub = _sublane_multiple(dtype)

    # --- M tiling: <=512 rows/block, near-equal blocks (minimal pad waste,
    #     and >=2 parallel M blocks when M is large -> megacore friendly).
    if m <= 512:
        grid_m = 1
        tm = _round_up(max(m, 1), sub)
    else:
        grid_m = _cdiv(m, 512)
        tm = _round_up(_cdiv(m, grid_m), sub)
    m_pad = tm * grid_m

    # --- Megacore (v7x): guarantee >=2 blocks on a 'parallel' axis when the
    #     problem is small.  Halve tn only when the result stays a multiple
    #     of 128 (it then still divides n_pad).
    tn_eff = tn
    if grid_m == 1 and (n_pad // tn_eff) == 1 and tn_eff % 256 == 0:
        tn_eff //= 2
    grid_n = n_pad // tn_eff
    grid_k = k_pad // tk

    # --- Only activations are padded per call (weight was padded once).
    if (m_pad, k_pad) != (m, in_features):
        x2d = jnp.pad(x2d, ((0, m_pad - m), (0, k_pad - in_features)))

    # --- Explicit VMEM limit sized from the double-buffered footprint,
    #     capped for v7x's 64 MiB and raised above v5e's 16 MiB default.
    footprint = (2 * (tm * tk * itemsize          # x tiles (double-buffered)
                      + tk * tn_eff * w_itemsize  # weight tiles
                      + tm * tn_eff * itemsize    # output tiles
                      + tn_eff * w_itemsize)      # bias tiles
                 + tm * tn_eff * 4)               # f32 accumulator scratch
    vmem_limit = int(min(max(footprint * 3 // 2, 32 * 1024 * 1024),
                         _vmem_budget_bytes()))

    cost = pl.CostEstimate(
        flops=2 * m * out_features * in_features,
        transcendentals=0,
        bytes_accessed=(m * in_features * itemsize
                        + in_features * out_features * w_itemsize
                        + out_features * w_itemsize
                        + m * out_features * itemsize),
    )

    out = pl.pallas_call(
        _linear_kernel,
        out_shape=jax.ShapeDtypeStruct((m_pad, n_pad), dtype),
        grid_spec=pltpu.PrefetchScalarGridSpec(
            num_scalar_prefetch=0,
            grid=(grid_m, grid_n, grid_k),
            in_specs=[
                # activations: (tm, tk) tile at (i, k)
                pl.BlockSpec((tm, tk), lambda i, j, kk: (i, kk)),
                # weight, pre-transposed (K, N): (tk, tn) tile at (k, j)
                pl.BlockSpec((tk, tn_eff), lambda i, j, kk: (kk, j)),
                # bias row: (1, tn) tile at (0, j)
                pl.BlockSpec((1, tn_eff), lambda i, j, kk: (0, j)),
            ],
            out_specs=pl.BlockSpec((tm, tn_eff), lambda i, j, kk: (i, j)),
            scratch_shapes=[pltpu.VMEM((tm, tn_eff), jnp.float32)],
        ),
        compiler_params=pltpu.CompilerParams(
            dimension_semantics=("parallel", "parallel", "arbitrary"),
            vmem_limit_bytes=vmem_limit,
        ),
        cost_estimate=cost,
    )(x2d, w_kn, b_row)

    if (m_pad, n_pad) != (m, out_features):
        out = out[:m, :out_features]
    if len(dims) > 2:
        return out.reshape(*dims[:-1], out_features)
    return out


def make_linear(weight, bias=None):
    """Recommended path: prepare (transpose+pad) params once, return a jitted
    forward function equivalent to the PyTorch module's forward."""
    w_kn, b_row, meta = prepare_linear_params(weight, bias)
    fwd = jax.jit(functools.partial(_linear_apply, **meta))
    return lambda x: fwd(x, w_kn, b_row)


def linear_forward(x, weight, bias=None):
    """One-shot convenience wrapper (prep happens per call)."""
    return make_linear(weight, bias)(x)


def init_linear_params(key, in_features, out_features, dtype=jnp.float32):
    """Deterministic init matching nn.Linear shapes (kaiming-uniform-ish)."""
    k_w, k_b = jax.random.split(key)
    bound = 1.0 / (in_features ** 0.5)
    weight = jax.random.uniform(
        k_w, (out_features, in_features), dtype=dtype, minval=-bound, maxval=bound
    )
    bias = jax.random.uniform(
        k_b, (out_features,), dtype=dtype, minval=-bound, maxval=bound
    )
    return weight, bias


if __name__ == "__main__":
    key = jax.random.PRNGKey(0)
    k_x, k_p, k_x2, k_p2 = jax.random.split(key, 4)

    # --- small shapes exercising padding + flatten/restore (3-D) path ---
    in_features, out_features = 32, 64
    batch, seq = 2, 8
    weight, bias = init_linear_params(k_p, in_features, out_features)
    x = jax.random.normal(k_x, (batch, seq, in_features), dtype=jnp.float32)

    lin = make_linear(weight, bias)           # one-time prep (transpose + pad)
    y = jax.block_until_ready(lin(x))
    assert y.shape == (batch, seq, out_features), y.shape
    y_ref = x @ weight.T + bias
    assert jnp.allclose(y, y_ref, atol=1e-5, rtol=1e-5)

    # --- 2-D path (same prepared params, different leading shape) ---
    x2 = jax.random.normal(k_x, (batch, in_features), dtype=jnp.float32)
    y2 = jax.block_until_ready(lin(x2))
    assert y2.shape == (batch, out_features)
    assert jnp.allclose(y2, x2 @ weight.T + bias, atol=1e-5, rtol=1e-5)

    # --- non-aligned features exercising padding + multi-tile grids ---
    in_f2, out_f2, m2 = 160, 640, 24
    w2, b2 = init_linear_params(k_p2, in_f2, out_f2)
    x3 = jax.random.normal(k_x2, (m2, in_f2), dtype=jnp.float32)
    y3 = jax.block_until_ready(linear_forward(x3, w2, b2))
    assert y3.shape == (m2, out_f2)
    assert jnp.allclose(y3, x3 @ w2.T + b2, atol=1e-4, rtol=1e-4)

    # --- bias=None path (allowed by nn.Linear) ---
    y4 = jax.block_until_ready(linear_forward(x3, w2, None))
    assert jnp.allclose(y4, x3 @ w2.T, atol=1e-4, rtol=1e-4)

    print("KERNEL_OK")
</pallas_src>

<mosaic_0001>
module attributes {stable_mosaic.version = 11 : i64} {
  func.func @_linear_kernel(%arg0: i32, %arg1: i32, %arg2: i32, %arg3: memref<16x128xf32, #tpu.memory_space<vmem>>, %arg4: memref<128x128xf32, #tpu.memory_space<vmem>>, %arg5: memref<1x128xf32, #tpu.memory_space<vmem>>, %arg6: memref<16x128xf32, #tpu.memory_space<vmem>>, %arg7: memref<16x128xf32, #tpu.memory_space<vmem>>) attributes {dimension_semantics = [#tpu.dimension_semantics<parallel>, #tpu.dimension_semantics<parallel>, #tpu.dimension_semantics<arbitrary>], iteration_bounds = array<i64: 1, 1, 1>, scalar_prefetch = 0 : i64, scratch_operands = 1 : i64, tpu.core_type = #tpu.core_type<tc>, window_params = [{transform_indices = @transform_0, window_bounds = array<i64: 16, 128>}, {transform_indices = @transform_1, window_bounds = array<i64: 128, 128>}, {transform_indices = @transform_2, window_bounds = array<i64: 1, 128>}, {transform_indices = @transform_3, window_bounds = array<i64: 16, 128>}]} {
    %c0_i32 = arith.constant 0 : i32
    %0 = arith.cmpi eq, %arg2, %c0_i32 : i32
    %1 = arith.extui %0 : i1 to i32
    %c0_i32_0 = arith.constant 0 : i32
    %2 = arith.cmpi ne, %1, %c0_i32_0 : i32
    scf.if %2 {
      %cst_10 = arith.constant 0.000000e+00 : f32
      %12 = vector.broadcast %cst_10 : f32 to vector<16x128xf32>
      %c0_11 = arith.constant 0 : index
      %c0_12 = arith.constant 0 : index
      %13 = vector.load %arg7[%c0_11, %c0_12] : memref<16x128xf32, #tpu.memory_space<vmem>>, vector<16x128xf32>
      tpu.vector_store %arg7[%c0_11, %c0_12], %12 {strides = array<i32>} : memref<16x128xf32, #tpu.memory_space<vmem>>, vector<16x128xf32>,
    } else {
    }
    %c0 = arith.constant 0 : index
    %c0_1 = arith.constant 0 : index
    %3 = vector.load %arg7[%c0, %c0_1] : memref<16x128xf32, #tpu.memory_space<vmem>>, vector<16x128xf32>
    %c0_2 = arith.constant 0 : index
    %c0_3 = arith.constant 0 : index
    %4 = vector.load %arg3[%c0_2, %c0_3] : memref<16x128xf32, #tpu.memory_space<vmem>>, vector<16x128xf32>
    %c0_4 = arith.constant 0 : index
    %c0_5 = arith.constant 0 : index
    %5 = vector.load %arg4[%c0_4, %c0_5] : memref<128x128xf32, #tpu.memory_space<vmem>>, vector<128x128xf32>
    %cst = arith.constant dense<0.000000e+00> : vector<16x128xf32>
    %6 = tpu.matmul %4, %5, %cst {dimension_numbers = #tpu.dot_dimension_numbers<[1], [0], [0], [1], [0, 0, 1, 1], [], []>} : vector<16x128xf32>, vector<128x128xf32>, vector<16x128xf32> -> vector<16x128xf32>
    %7 = arith.addf %3, %6 : vector<16x128xf32>
    %c0_6 = arith.constant 0 : index
    %c0_7 = arith.constant 0 : index
    %8 = vector.load %arg7[%c0_6, %c0_7] : memref<16x128xf32, #tpu.memory_space<vmem>>, vector<16x128xf32>
    tpu.vector_store %arg7[%c0_6, %c0_7], %7 {strides = array<i32>} : memref<16x128xf32, #tpu.memory_space<vmem>>, vector<16x128xf32>,
    %c0_i32_8 = arith.constant 0 : i32
    %9 = arith.cmpi eq, %arg2, %c0_i32_8 : i32
    %10 = arith.extui %9 : i1 to i32
    %c0_i32_9 = arith.constant 0 : i32
    %11 = arith.cmpi ne, %10, %c0_i32_9 : i32
    scf.if %11 {
      %c0_10 = arith.constant 0 : index
      %c0_11 = arith.constant 0 : index
      %12 = vector.load %arg7[%c0_10, %c0_11] : memref<16x128xf32, #tpu.memory_space<vmem>>, vector<16x128xf32>
      %c0_12 = arith.constant 0 : index
      %c0_13 = arith.constant 0 : index
      %13 = vector.load %arg5[%c0_12, %c0_13] : memref<1x128xf32, #tpu.memory_space<vmem>>, vector<1x128xf32>
      %14 = vector.broadcast %13 : vector<1x128xf32> to vector<16x128xf32>
      %15 = arith.addf %12, %14 : vector<16x128xf32>
      %c0_14 = arith.constant 0 : index
      %c0_15 = arith.constant 0 : index
      %16 = vector.load %arg6[%c0_14, %c0_15] : memref<16x128xf32, #tpu.memory_space<vmem>>, vector<16x128xf32>
      tpu.vector_store %arg6[%c0_14, %c0_15], %15 {strides = array<i32>} : memref<16x128xf32, #tpu.memory_space<vmem>>, vector<16x128xf32>,
    } else {
    }
    return
  }
  func.func @transform_0(%arg0: i32, %arg1: i32, %arg2: i32) -> (i32, i32) {
    %c0_i32 = arith.constant 0 : i32
    return %arg0, %arg2 : i32, i32
  }
  func.func @transform_1(%arg0: i32, %arg1: i32, %arg2: i32) -> (i32, i32) {
    %c0_i32 = arith.constant 0 : i32
    return %arg2, %arg1 : i32, i32
  }
  func.func @transform_2(%arg0: i32, %arg1: i32, %arg2: i32) -> (i32, i32) {
    %c0_i32 = arith.constant 0 : i32
    %c0_i32_0 = arith.constant 0 : i32
    return %c0_i32, %arg1 : i32, i32
  }
  func.func @transform_3(%arg0: i32, %arg1: i32, %arg2: i32) -> (i32, i32) {
    %c0_i32 = arith.constant 0 : i32
    return %arg0, %arg1 : i32, i32
  }
}

</mosaic_0001>

<bundles_post_ra>
// kernel: _linear_apply.1
= control target key start
LH: loop header
LB: loop body
LE: loop exit
PB: predicated region body
PF: predicated region fallthrough
CT: control target
= control target key end

     0   :  { %8 = vsyncpa [#allocation4], 0  ;;  %s147_s15 = smov [#allocation3]   ;;  %s148_s17 = smov 128   ;;  %s188_s0 = inlined_call_operand.vmem [shape: f32[16,128], index: 0, kind: input, shape index: {}]   ;;  %s189_s1 = inlined_call_operand.hbm [shape: f32[128,128], index: 1, kind: input, shape index: {}]   ;;  %s190_s2 = inlined_call_operand.vmem [shape: f32[1,128], index: 2, kind: input, shape index: {}]   ;;  %s191_s3 = inlined_call_operand.vmem [shape: f32[16,128], index: 3, kind: output, shape index: {}]  }
   0x1   :  { %s15_s14 = sshll.u32 %s189_s1, 4  ;;  %s17_s16 = sshll.u32 %s147_s15, 4  ;;  %s16_s14 = int_to_ptr.hbm [resolvable:$true] %s15_s14  ;;  %s18_s16 = int_to_ptr.vmem [resolvable:$true] %s17_s16 }
   0x2   :  { %s149_s18 = smov 8  }
   0x3   :  { %23 = dma.hbm_to_vmem [thread:$0]  %s16_s14, 2048, %s18_s16, [#allocation4], %s148_s17, %s148_s17, %s149_s18  }
   0x4   :  { %145 = dma.done.wait [#allocation4], 2048  }
   0x5   :  { %146 = vsyncadd [#allocation4], 4294965248  ;;  %v55_v0 = vld [vmem:[#allocation3 + $0x78] sm:$0xff]  ;;  %v54_v1 = vld [vmem:[#allocation3 + $0x70] sm:$0xff] }
   0x6   :  { %56 = vmatpush.msra.mxu0 %v55_v0  ;;  %101 = vmatpush.msra.mxu1 %v55_v0  ;;  %v53_v2 = vld [vmem:[#allocation3 + $0x68] sm:$0xff]  ;;  %v52_v3 = vld [vmem:[#allocation3 + $0x60] sm:$0xff]  ;;  %v51_v4 = vld [vmem:[#allocation3 + $0x58] sm:$0xff] }
   0x7   :  { %v50_v5 = vld [vmem:[#allocation3 + $0x50] sm:$0xff]  ;;  %v49_v6 = vld [vmem:[#allocation3 + $0x48] sm:$0xff]  ;;  %v48_v7 = vld [vmem:[#allocation3 + $0x40] sm:$0xff] }
   0x8   :  { %57 = vmatpush.msra.mxu0 %v54_v1  ;;  %102 = vmatpush.msra.mxu1 %v54_v1  ;;  %v47_v8 = vld [vmem:[#allocation3 + $0x38] sm:$0xff]  ;;  %v46_v9 = vld [vmem:[#allocation3 + $0x30] sm:$0xff]  ;;  %v45_v10 = vld [vmem:[#allocation3 + $0x28] sm:$0xff] }
   0x9   :  { %v44_v11 = vld [vmem:[#allocation3 + $0x20] sm:$0xff]  ;;  %v43_v12 = vld [vmem:[#allocation3 + $0x18] sm:$0xff]  ;;  %v42_v13 = vld [vmem:[#allocation3 + $0x10] sm:$0xff] }
   0xa   :  { %58 = vmatpush.msra.mxu0 %v53_v2  ;;  %103 = vmatpush.msra.mxu1 %v53_v2  ;;  %v41_v14 = vld [vmem:[#allocation3 + $0x8] sm:$0xff]  ;;  %v40_v15 = vld [vmem:[#allocation3] sm:$0xff] }
   0xb   :  { %v38_v16 = vld [vmem:[%s188_s0] sm:$0xff]  ;;  %v39_v17 = vld [vmem:[%s188_s0 + $0x8] sm:$0xff] }
   0xc   :  { %59 = vmatpush.msra.mxu0 %v52_v3  ;;  %104 = vmatpush.msra.mxu1 %v52_v3  ;;  %v120_v18 = vld [vmem:[%s190_s2] ss:$0 sm:$0xff] }
   0xe   :  { %60 = vmatpush.msra.mxu0 %v51_v4  ;;  %105 = vmatpush.msra.mxu1 %v51_v4 }
  0x10   :  { %61 = vmatpush.msra.mxu0 %v50_v5  ;;  %106 = vmatpush.msra.mxu1 %v50_v5 }
  0x12   :  { %62 = vmatpush.msra.mxu0 %v49_v6  ;;  %107 = vmatpush.msra.mxu1 %v49_v6 }
  0x14   :  { %63 = vmatpush.msra.mxu0 %v48_v7  ;;  %108 = vmatpush.msra.mxu1 %v48_v7 }
  0x16   :  { %64 = vmatpush.msra.mxu0 %v47_v8  ;;  %109 = vmatpush.msra.mxu1 %v47_v8 }
  0x18   :  { %65 = vmatpush.msra.mxu0 %v46_v9  ;;  %110 = vmatpush.msra.mxu1 %v46_v9 }
  0x1a   :  { %66 = vmatpush.msra.mxu0 %v45_v10  ;;  %111 = vmatpush.msra.mxu1 %v45_v10 }
  0x1c   :  { %67 = vmatpush.msra.mxu0 %v44_v11  ;;  %112 = vmatpush.msra.mxu1 %v44_v11 }
  0x1e   :  { %68 = vmatpush.msra.mxu0 %v43_v12  ;;  %113 = vmatpush.msra.mxu1 %v43_v12 }
  0x20   :  { %69 = vmatpush.msra.mxu0 %v42_v13  ;;  %114 = vmatpush.msra.mxu1 %v42_v13 }
  0x22   :  { %70 = vmatpush.msra.mxu0 %v41_v14  ;;  %115 = vmatpush.msra.mxu1 %v41_v14 }
  0x24   :  { %71 = vmatpush.msra.mxu0 %v40_v15  ;;  %116 = vmatpush.msra.mxu1 %v40_v15 }
  0x25   :  { %72 = vmatmul.f32.vlgmr.msra.gmra.mxu0 %v38_v16  ;;  %75 = vmatmul.f32.vlgmr.msra.gmra.mxu1 %v39_v17 }
  0xa2   :  { %v73_v19 = vpop.f32.mrf.mxu0  ;;  %v76_v20 = vpop.f32.mrf.mxu1 }
  0xa3   :  { %v92_v21 = vadd.f32 %v120_v18, %v73_v19  ;;  %v93_v22 = vadd.f32 %v120_v18, %v76_v20 }
  0xa5   :  { %94 = vst [vmem:[%s191_s3] sm:$0xff] %v92_v21 }
  0xa6   :  { %95 = vst [vmem:[%s191_s3 + $0x8] sm:$0xff] %v93_v22 }
  0xa7   :  { %100 = vsyncpa [#allocation4], 1 }

</bundles_post_ra>
